<compile_context>
chip_gen: v7x
topology: tpu7x:2x2x1
jax: 0.10.0
libtpu: 0.0.40
codegen_flags: <defaults>
</compile_context>

<pallas_src>
import functools
import math

import numpy as np
import jax
import jax.numpy as jnp
from jax.experimental import pallas as pl
from jax.experimental.pallas import tpu as pltpu


def _round_up(x: int, m: int) -> int:
    return ((x + m - 1) // m) * m


def _spectrum_kernel(frames_ref, wins_ref, dft_ref, out_ref):
    # frames_ref: (tb, W)      current batch tile of frames (f32)
    # wins_ref  : (C, W)       all analysis windows (hann + gaussian extras), resident (f32)
    # dft_ref   : (W, Kp)      [cos | -sin | zero-pad] ortho DFT matrix, resident (bf16)
    # out_ref   : (C, tb, Kp)  real part in cols [0, F), imag (k=1..) in cols [F, F+n_im)
    x = frames_ref[...]                        # (tb, W)
    wins = wins_ref[...]                       # (C, W)
    dft = dft_ref[...]                         # (W, Kp) bf16
    C, W = wins.shape
    tb = x.shape[0]
    Kp = dft.shape[1]
    # Window all channels at once; tb is a multiple of 8 so collapsing (C, tb)
    # into the sublane dim is a layout-free reshape. Windowing stays f32; only
    # the MXU operands are cast to bf16 (f32 accumulate).
    xw = (wins[:, None, :] * x[None, :, :]).reshape(C * tb, W)            # (C*tb, W) f32
    res = jnp.dot(xw.astype(jnp.bfloat16), dft,
                  preferred_element_type=jnp.float32)                     # (C*tb, Kp) f32
    out_ref[...] = res.reshape(C, tb, Kp)


@functools.lru_cache(maxsize=None)
def make_spectrum_windows(window_size: int, n_extra_wins: int) -> jnp.ndarray:
    """Deterministic parameter init, matching Spectrum.__init__ / GaussianWindows."""
    n = np.arange(window_size, dtype=np.float64)
    # torch.hann_window default (periodic=True): 0.5 * (1 - cos(2*pi*n/N))
    hann = 0.5 * (1.0 - np.cos(2.0 * np.pi * n / window_size))
    wins = [hann[None, :]]
    if n_extra_wins > 0:
        # sigma param = -1 -> sigmoid(-1); center param = logit(i/(n+1)) -> sigmoid = i/(n+1)
        sigma = 1.0 / (1.0 + math.exp(1.0))
        center = np.arange(1, n_extra_wins + 1, dtype=np.float64) / (n_extra_wins + 1)
        x = n[:, None]                                              # (W, 1)
        Y = np.exp(-0.5 * ((x - window_size * center[None, :])
                           / (sigma * window_size / 2.0)) ** 2)     # (W, nExtra)
        wins.append(Y.T)                                            # (nExtra, W)
    return jnp.asarray(np.concatenate(wins, axis=0), dtype=jnp.float32)


@functools.lru_cache(maxsize=None)
def _make_dft_matrix(W: int, F: int, Kp: int) -> jnp.ndarray:
    """(W, Kp) bfloat16 fused real-DFT matrix (ortho scaled).

    cols [0, F)        : cos(2*pi*n*k/W),  k = 0..F-1
    cols [F, F+n_im)   : -sin(2*pi*n*k/W), k = 1..n_im  (imag of DC and, for even
                         W, Nyquist are identically zero and are not stored)
    remaining cols     : zero lane padding (only if K is not a multiple of 128)

    Angles built from exact integer (n*k mod W) reduction in float64.
    """
    n_im = F - 2 if W % 2 == 0 else F - 1
    n = np.arange(W, dtype=np.int64)
    k_re = np.arange(F, dtype=np.int64)
    k_im = np.arange(1, 1 + n_im, dtype=np.int64)
    scale = 1.0 / math.sqrt(W)
    ang_re = 2.0 * np.pi * np.mod(np.outer(n, k_re), W).astype(np.float64) / W
    ang_im = 2.0 * np.pi * np.mod(np.outer(n, k_im), W).astype(np.float64) / W
    dft = np.zeros((W, Kp), dtype=np.float32)
    dft[:, :F] = np.cos(ang_re) * scale
    dft[:, F:F + n_im] = -np.sin(ang_im) * scale
    return jnp.asarray(dft, dtype=jnp.bfloat16)


def spectrum_forward(frames: jnp.ndarray, wins: jnp.ndarray,
                     *, log: bool = False, tb: int = 256) -> jnp.ndarray:
    """Pallas implementation of Spectrum.forward.

    frames: (..., W) float32
    wins  : (C, W)   float32
    returns: (..., F, C) complex64   with F = W//2 + 1
    """
    W = int(frames.shape[-1])
    F = W // 2 + 1
    C = int(wins.shape[0])
    lead = frames.shape[:-1]
    B = int(np.prod(lead)) if lead else 1

    n_im = F - 2 if W % 2 == 0 else F - 1      # imag bins k = 1..n_im
    K = F + n_im                               # == W for any W >= 2
    Kp = _round_up(K, 128)                     # lane-dense output width

    # Generation-aware VMEM budget.
    try:
        vmem_cap = int(pltpu.get_tpu_info().vmem_capacity_bytes)
    except Exception:
        vmem_cap = 64 * 2 ** 20                # conservative: v7x per-core VMEM
    budget = max(16 * 2 ** 20, vmem_cap - 8 * 2 ** 20)

    # Batch tile: 8-aligned. For tiny batches, pad tb UP (not down) so the MXU
    # LHS keeps roughly >= 512 rows per RHS weight push; then shrink only if
    # the per-step VMEM footprint would blow the budget.
    tb = _round_up(max(8, int(tb)), 8)
    min_tb = _round_up(max(8, (512 + C - 1) // C), 8)
    tb = max(min(tb, _round_up(B, 8)), min(tb, min_tb))

    def vmem_bytes(t: int) -> int:
        return (2 * t * W * 4            # frames tile, double-buffered
                + C * W * 4              # windows, single-buffered
                + W * Kp * 2             # bf16 DFT, single-buffered
                + 2 * C * t * Kp * 4     # output tile, double-buffered
                + C * t * W * 6          # xw temporaries (f32 + bf16)
                + C * t * Kp * 4)        # matmul result temporary

    while vmem_bytes(tb) > budget and tb > 8:
        tb = max(8, _round_up(tb // 2, 8))
    # TODO(synk): for very large W (bf16 DFT alone exceeding the budget), add a
    # second grid axis over Kp so only a (W, tk) DFT slice is resident per step.

    B_pad = _round_up(B, tb)
    frames2 = frames.reshape(B, W).astype(jnp.float32)
    if B_pad != B:
        frames2 = jnp.pad(frames2, ((0, B_pad - B), (0, 0)))

    dft = _make_dft_matrix(W, F, Kp)           # (W, Kp) bf16, cached host-side
    wins_f32 = wins.astype(jnp.float32)

    vmem_limit = int(min(budget, max(vmem_bytes(tb) * 5 // 4, 16 * 2 ** 20)))
    flops = 2.0 * C * B_pad * W * Kp + C * B_pad * W
    bytes_accessed = 4.0 * (B_pad * W + C * W + C * B_pad * Kp) + 2.0 * W * Kp

    def build_call(single_buffer_resident: bool):
        res_kw = ({"pipeline_mode": pl.Buffered(1)}
                  if single_buffer_resident else {})
        return pl.pallas_call(
            _spectrum_kernel,
            out_shape=jax.ShapeDtypeStruct((C, B_pad, Kp), jnp.float32),
            grid_spec=pltpu.PrefetchScalarGridSpec(
                num_scalar_prefetch=0,
                grid=(B_pad // tb,),
                in_specs=[
                    pl.BlockSpec((tb, W), lambda i: (i, 0)),             # frames tile
                    pl.BlockSpec((C, W), lambda i: (0, 0), **res_kw),    # windows (resident)
                    pl.BlockSpec((W, Kp), lambda i: (0, 0), **res_kw),   # fused DFT (resident)
                ],
                out_specs=pl.BlockSpec((C, tb, Kp), lambda i: (0, i, 0)),
            ),
            compiler_params=pltpu.CompilerParams(
                dimension_semantics=("parallel",),
                vmem_limit_bytes=vmem_limit),
            cost_estimate=pl.CostEstimate(flops=int(flops), transcendentals=0,
                                          bytes_accessed=int(bytes_accessed)),
        )

    try:
        out = build_call(True)(frames2, wins_f32, dft)
    except Exception:
        # Fallback for jax versions without BlockSpec pipeline_mode / Buffered(1):
        # resident inputs are double-buffered (only costs extra VMEM).
        out = build_call(False)(frames2, wins_f32, dft)

    out = out[:, :B, :]                               # drop batch padding  (C, B, Kp)
    re = out[..., :F]                                 # (C, B, F)
    im = out[..., F:F + n_im]                         # (C, B, n_im)
    im = jnp.pad(im, ((0, 0), (0, 0), (1, F - 1 - n_im)))   # zero DC (and Nyquist)
    spec = jax.lax.complex(re, im)                    # (C, B, F) complex64
    if log:
        # Matches torch.complex(spectrogram.abs(), spectrogram.angle()).
        # TODO(synk): fuse abs/angle into the kernel epilogue (idle EUP/VPU slots).
        spec = jax.lax.complex(jnp.abs(spec), jnp.angle(spec))
    spec = jnp.transpose(spec, (1, 0, 2)).reshape(lead + (C, F))   # (..., C, F)
    return jnp.swapaxes(spec, -1, -2)                              # (..., F, C)


if __name__ == "__main__":
    window_size = 64          # W
    n_extra_wins = 3          # -> nChannel = 4
    batch, seq = 2, 8         # leading dims; B = 16 frames total

    key = jax.random.PRNGKey(0)
    frames = jax.random.normal(key, (batch, seq, window_size), dtype=jnp.float32)

    wins = make_spectrum_windows(window_size, n_extra_wins)   # (4, 64)

    out = spectrum_forward(frames, wins, log=False)
    out = jax.block_until_ready(out)

    # Reference check against jnp.fft.rfft (same math as torch.fft.rfft, norm='ortho').
    # bf16 MXU operands (f32 accumulate) give ~1e-3 relative spectral error.
    ref = jnp.fft.rfft(frames[..., None, :] * wins, norm='ortho')  # (..., C, F)
    ref = jnp.swapaxes(ref, -1, -2)                                # (..., F, C)
    np.testing.assert_allclose(np.asarray(out), np.asarray(ref), atol=2e-2, rtol=2e-2)

    assert out.shape == (batch, seq, window_size // 2 + 1, n_extra_wins + 1)
    assert out.dtype == jnp.complex64
    print("KERNEL_OK")
</pallas_src>

<mosaic_0001>
module attributes {stable_mosaic.version = 11 : i64} {
  func.func @_spectrum_kernel(%arg0: i32, %arg1: memref<128x64xf32, #tpu.memory_space<vmem>>, %arg2: memref<4x64xf32, #tpu.memory_space<vmem>>, %arg3: memref<64x128xbf16, #tpu.memory_space<vmem>>, %arg4: memref<4x128x128xf32, #tpu.memory_space<vmem>>) attributes {dimension_semantics = [#tpu.dimension_semantics<parallel>], iteration_bounds = array<i64: 1>, scalar_prefetch = 0 : i64, scratch_operands = 0 : i64, tpu.core_type = #tpu.core_type<tc>, window_params = [{transform_indices = @transform_0, window_bounds = array<i64: 128, 64>}, {pipeline_mode = #tpu.pipeline_mode<synchronous>, transform_indices = @transform_1, window_bounds = array<i64: 4, 64>}, {pipeline_mode = #tpu.pipeline_mode<synchronous>, transform_indices = @transform_2, window_bounds = array<i64: 64, 128>}, {transform_indices = @transform_3, window_bounds = array<i64: 4, 128, 128>}]} {
    %c0 = arith.constant 0 : index
    %c0_0 = arith.constant 0 : index
    %0 = vector.load %arg1[%c0, %c0_0] : memref<128x64xf32, #tpu.memory_space<vmem>>, vector<128x64xf32>
    %c0_1 = arith.constant 0 : index
    %c0_2 = arith.constant 0 : index
    %1 = vector.load %arg2[%c0_1, %c0_2] : memref<4x64xf32, #tpu.memory_space<vmem>>, vector<4x64xf32>
    %c0_3 = arith.constant 0 : index
    %c0_4 = arith.constant 0 : index
    %2 = vector.load %arg3[%c0_3, %c0_4] : memref<64x128xbf16, #tpu.memory_space<vmem>>, vector<64x128xbf16>
    %3 = vector.shape_cast %1 : vector<4x64xf32> to vector<4x1x64xf32>
    %4 = vector.shape_cast %0 : vector<128x64xf32> to vector<1x128x64xf32>
    %5 = vector.broadcast %3 : vector<4x1x64xf32> to vector<4x128x64xf32>
    %6 = vector.broadcast %4 : vector<1x128x64xf32> to vector<4x128x64xf32>
    %7 = arith.mulf %5, %6 : vector<4x128x64xf32>
    %8 = vector.shape_cast %7 : vector<4x128x64xf32> to vector<512x64xf32>
    %9 = arith.truncf %8 : vector<512x64xf32> to vector<512x64xbf16>
    %cst = arith.constant dense<0.000000e+00> : vector<512x128xf32>
    %10 = tpu.matmul %9, %2, %cst {dimension_numbers = #tpu.dot_dimension_numbers<[1], [0], [0], [1], [0, 0, 1, 1], [], []>} : vector<512x64xbf16>, vector<64x128xbf16>, vector<512x128xf32> -> vector<512x128xf32>
    %11 = vector.shape_cast %10 : vector<512x128xf32> to vector<4x128x128xf32>
    %c0_5 = arith.constant 0 : index
    %c0_6 = arith.constant 0 : index
    %c0_7 = arith.constant 0 : index
    %12 = vector.load %arg4[%c0_5, %c0_6, %c0_7] : memref<4x128x128xf32, #tpu.memory_space<vmem>>, vector<4x128x128xf32>
    tpu.vector_store %arg4[%c0_5, %c0_6, %c0_7], %11 {strides = array<i32>} : memref<4x128x128xf32, #tpu.memory_space<vmem>>, vector<4x128x128xf32>,
    return
  }
  func.func @transform_0(%arg0: i32) -> (i32, i32) {
    %c0_i32 = arith.constant 0 : i32
    %c0_i32_0 = arith.constant 0 : i32
    return %arg0, %c0_i32 : i32, i32
  }
  func.func @transform_1(%arg0: i32) -> (i32, i32) {
    %c0_i32 = arith.constant 0 : i32
    %c0_i32_0 = arith.constant 0 : i32
    %c0_i32_1 = arith.constant 0 : i32
    return %c0_i32, %c0_i32_0 : i32, i32
  }
  func.func @transform_2(%arg0: i32) -> (i32, i32) {
    %c0_i32 = arith.constant 0 : i32
    %c0_i32_0 = arith.constant 0 : i32
    %c0_i32_1 = arith.constant 0 : i32
    return %c0_i32, %c0_i32_0 : i32, i32
  }
  func.func @transform_3(%arg0: i32) -> (i32, i32, i32) {
    %c0_i32 = arith.constant 0 : i32
    %c0_i32_0 = arith.constant 0 : i32
    %c0_i32_1 = arith.constant 0 : i32
    return %c0_i32, %arg0, %c0_i32_0 : i32, i32, i32
  }
}

module attributes {stable_mosaic.version = 11 : i64} {
  func.func @_spectrum_kernel(%arg0: i32, %arg1: memref<128x64xf32, #tpu.memory_space<vmem>>, %arg2: memref<4x64xf32, #tpu.memory_space<vmem>>, %arg3: memref<64x128xbf16, #tpu.memory_space<vmem>>, %arg4: memref<4x128x128xf32, #tpu.memory_space<vmem>>) attributes {dimension_semantics = [#tpu.dimension_semantics<parallel>], iteration_bounds = array<i64: 1>, scalar_prefetch = 0 : i64, scratch_operands = 0 : i64, tpu.core_type = #tpu.core_type<tc>, window_params = [{transform_indices = @transform_0, window_bounds = array<i64: 128, 64>}, {pipeline_mode = #tpu.pipeline_mode<synchronous>, transform_indices = @transform_1, window_bounds = array<i64: 4, 64>}, {pipeline_mode = #tpu.pipeline_mode<synchronous>, transform_indices = @transform_2, window_bounds = array<i64: 64, 128>}, {transform_indices = @transform_3, window_bounds = array<i64: 4, 128, 128>}]} {
    %c0 = arith.constant 0 : index
    %c0_0 = arith.constant 0 : index
    %0 = vector.load %arg1[%c0, %c0_0] : memref<128x64xf32, #tpu.memory_space<vmem>>, vector<128x64xf32>
    %c0_1 = arith.constant 0 : index
    %c0_2 = arith.constant 0 : index
    %1 = vector.load %arg2[%c0_1, %c0_2] : memref<4x64xf32, #tpu.memory_space<vmem>>, vector<4x64xf32>
    %c0_3 = arith.constant 0 : index
    %c0_4 = arith.constant 0 : index
    %2 = vector.load %arg3[%c0_3, %c0_4] : memref<64x128xbf16, #tpu.memory_space<vmem>>, vector<64x128xbf16>
    %3 = vector.shape_cast %1 : vector<4x64xf32> to vector<4x1x64xf32>
    %4 = vector.shape_cast %0 : vector<128x64xf32> to vector<1x128x64xf32>
    %5 = vector.broadcast %3 : vector<4x1x64xf32> to vector<4x128x64xf32>
    %6 = vector.broadcast %4 : vector<1x128x64xf32> to vector<4x128x64xf32>
    %7 = arith.mulf %5, %6 : vector<4x128x64xf32>
    %8 = vector.shape_cast %7 : vector<4x128x64xf32> to vector<512x64xf32>
    %9 = arith.truncf %8 : vector<512x64xf32> to vector<512x64xbf16>
    %cst = arith.constant dense<0.000000e+00> : vector<512x128xf32>
    %10 = tpu.matmul %9, %2, %cst {dimension_numbers = #tpu.dot_dimension_numbers<[1], [0], [0], [1], [0, 0, 1, 1], [], []>} : vector<512x64xbf16>, vector<64x128xbf16>, vector<512x128xf32> -> vector<512x128xf32>
    %11 = vector.shape_cast %10 : vector<512x128xf32> to vector<4x128x128xf32>
    %c0_5 = arith.constant 0 : index
    %c0_6 = arith.constant 0 : index
    %c0_7 = arith.constant 0 : index
    %12 = vector.load %arg4[%c0_5, %c0_6, %c0_7] : memref<4x128x128xf32, #tpu.memory_space<vmem>>, vector<4x128x128xf32>
    tpu.vector_store %arg4[%c0_5, %c0_6, %c0_7], %11 {strides = array<i32>} : memref<4x128x128xf32, #tpu.memory_space<vmem>>, vector<4x128x128xf32>,
    return
  }
  func.func @transform_0(%arg0: i32) -> (i32, i32) {
    %c0_i32 = arith.constant 0 : i32
    %c0_i32_0 = arith.constant 0 : i32
    return %arg0, %c0_i32 : i32, i32
  }
  func.func @transform_1(%arg0: i32) -> (i32, i32) {
    %c0_i32 = arith.constant 0 : i32
    %c0_i32_0 = arith.constant 0 : i32
    %c0_i32_1 = arith.constant 0 : i32
    return %c0_i32, %c0_i32_0 : i32, i32
  }
  func.func @transform_2(%arg0: i32) -> (i32, i32) {
    %c0_i32 = arith.constant 0 : i32
    %c0_i32_0 = arith.constant 0 : i32
    %c0_i32_1 = arith.constant 0 : i32
    return %c0_i32, %c0_i32_0 : i32, i32
  }
  func.func @transform_3(%arg0: i32) -> (i32, i32, i32) {
    %c0_i32 = arith.constant 0 : i32
    %c0_i32_0 = arith.constant 0 : i32
    %c0_i32_1 = arith.constant 0 : i32
    return %c0_i32, %arg0, %c0_i32_0 : i32, i32, i32
  }
}

</mosaic_0001>

<bundles_post_ra>
// kernel: tpu_custom_call.1
= control target key start
LH: loop header
LB: loop body
LE: loop exit
PB: predicated region body
PF: predicated region fallthrough
CT: control target
= control target key end

     0   :  { %v53_v2 = vlaneseq  ;;  %v857_v4 = vmov 1966171168   ;;  %s1171_s0 = inlined_call_operand.vmem [shape: f32[128,64], index: 0, kind: input, shape index: {}]   ;;  %s1172_s1 = inlined_call_operand.vmem [shape: f32[4,64], index: 1, kind: input, shape index: {}]   ;;  %s1173_s2 = inlined_call_operand.vmem [shape: bf16[64,128], index: 2, kind: input, shape index: {}]   ;;  %s1174_s3 = inlined_call_operand.hbm [shape: f32[4,128,128], index: 3, kind: output, shape index: {}]  }
   0x1   :  { %v829_v0 = vld [vmem:[%s1173_s2] sm:$0xff]   ;;  %v830_v1 = vld [vmem:[%s1173_s2 + $0x8] sm:$0xff]   ;;  %v831_v3 = vld [vmem:[%s1173_s2 + $0x10] sm:$0xff]   ;;  %v51_v5 = vunpack.c.l.s4 %v857_v4 }
   0x2   :  { %745 = vmatprep.subr.bf16.mxu0 %v829_v0  ;;  %817 = vmatprep.subr.bf16.mxu1 %v829_v0  ;;  %v54_v6 = vshrl.u32 %v53_v2, 7  ;;  %v832_v7 = vld [vmem:[%s1173_s2 + $0x18] sm:$0xff]   ;;  %v896_v9 = vld.sshfl [vmem:[%s1172_s1] sm:$0x33 pattern:$0x75316420] }
   0x3   :  { %746 = vmatpush3.bf16.msra.mxu0 %v829_v0  ;;  %821 = vmatpush3.bf16.msra.mxu1 %v829_v0  ;;  %v52_v8 = vunpack.c.0.s8 %v51_v5 }
   0x4   :  { %747 = vmatprep.subr.bf16.mxu0 %v830_v1  ;;  %818 = vmatprep.subr.bf16.mxu1 %v830_v1 }
   0x7   :  { %748 = vmatpush3.bf16.msra.mxu0 %v830_v1  ;;  %822 = vmatpush3.bf16.msra.mxu1 %v830_v1 }
   0x8   :  { %749 = vmatprep.subr.bf16.mxu0 %v831_v3  ;;  %819 = vmatprep.subr.bf16.mxu1 %v831_v3 }
   0x9   :  { %8 = vsyncpa [#allocation3], 0  ;;  %v898_v10 = vsub.s32 %v52_v8, %v54_v6  ;;  %v900_v11 = vsub.s32 0, %v54_v6  ;;  %v907_v13 = vld [vmem:[%s1171_s0] sm:$0xff]  ;;  %v912_v14 = vld [vmem:[%s1171_s0 + $0x8] sm:$0xff]  ;;  %vm206_vm0 = vcmask 523264   ;;  %v49_v50 = vcombine.high %v896_v9, %v896_v9 }
   0xa   :  { %v917_v15 = vld [vmem:[%s1171_s0 + $0x10] sm:$0xff]  ;;  %v925_v18 = vld [vmem:[%s1171_s0 + $0x18] sm:$0xff]  ;;  %v930_v19 = vld [vmem:[%s1171_s0 + $0x20] sm:$0xff] }
   0xb   :  { %750 = vmatpush3.bf16.msra.mxu0 %v831_v3  ;;  %823 = vmatpush3.bf16.msra.mxu1 %v831_v3  ;;  %v56_v12 = vrot.slane %v896_v9, %v898_v10  ;;  %v935_v20 = vld [vmem:[%s1171_s0 + $0x28] sm:$0xff]  ;;  %v961_v32 = vld [vmem:[%s1171_s0 + $0x30] sm:$0xff]  ;;  %v966_v33 = vld [vmem:[%s1171_s0 + $0x38] sm:$0xff]  ;;  %v63_v60 = vrot.slane %v49_v50, %v898_v10 }
   0xc   :  { %751 = vmatprep.subr.bf16.mxu0 %v832_v7  ;;  %820 = vmatprep.subr.bf16.mxu1 %v832_v7  ;;  %v975_v38 = vld [vmem:[%s1171_s0 + $0x40] sm:$0xff]  ;;  %v980_v39 = vld [vmem:[%s1171_s0 + $0x48] sm:$0xff]  ;;  %v1011_v55 = vld [vmem:[%s1171_s0 + $0x50] sm:$0xff] }
   0xd   :  { %v920_v16 = vrot.slane %v56_v12, %v900_v11  ;;  %v64_v17 = vcombine.high %v56_v12, %v56_v12  ;;  %v1016_v56 = vld [vmem:[%s1171_s0 + $0x58] sm:$0xff]  ;;  %v1021_v58 = vld [vmem:[%s1171_s0 + $0x60] sm:$0xff]  ;;  %v1026_v59 = vld [vmem:[%s1171_s0 + $0x68] sm:$0xff]  ;;  %v65_v6 = vcombine.high %v63_v60, %v63_v60  ;;  %v1060_v12 = vrot.slane %v63_v60, %v900_v11 }
   0xe   :  { %v1052_v9 = vld [vmem:[%s1171_s0 + $0x70] sm:$0xff]  ;;  %v1057_v10 = vld [vmem:[%s1171_s0 + $0x78] sm:$0xff]  ;;  %s858_s0 = smov [#allocation2]  }
   0xf   :  { %752 = vmatpush3.bf16.msra.mxu0 %v832_v7  ;;  %824 = vmatpush3.bf16.msra.mxu1 %v832_v7  ;;  %v86_v21 = vmul.f32 %v920_v16, %v907_v13  ;;  %v87_v22 = vmul.f32 %v920_v16, %v912_v14  ;;  %v942_v23 = vrot.slane %v64_v17, %v900_v11  ;;  %s661_s1 = sshll.u32 %s858_s0, 4  ;;  %s662_s1 = int_to_ptr.vmem [resolvable:$true] %s661_s1 }
  0x10   :  { %v88_v24 = vmul.f32 %v920_v16, %v917_v15  ;;  %v89_v25 = vmul.f32 %v920_v16, %v925_v18  ;;  %v90_v26 = vmul.f32 %v920_v16, %v930_v19  ;;  %v91_v27 = vmul.f32 %v920_v16, %v935_v20  ;;  %s833_s24 = scalar_lea.vmem %s662_s1, 8192  ;;  %p838_p1 = scmp.lt.s32.totalorder %s662_s1, %s662_s1 }
  0x11   :  { %v150_v28 = vpack.c.bf16 %v87_v22, %v86_v21  ;;  %v118_v29 = vmul.f32 %v942_v23, %v907_v13  ;;  %v119_v30 = vmul.f32 %v942_v23, %v912_v14  ;;  %v120_v31 = vmul.f32 %v942_v23, %v917_v15  ;;  %p834_p0 = scmp.ne.s32.totalorder %s662_s1, %s833_s24  ;;  %p839_p2 = scmp.lt.s32.totalorder %s833_s24, %s833_s24 }
  0x12   :  { %v151_v34 = vpack.c.bf16 %v89_v25, %v88_v24  ;;  %v121_v35 = vmul.f32 %v942_v23, %v925_v18  ;;  %v152_v36 = vpack.c.bf16 %v91_v27, %v90_v26  ;;  %v122_v37 = vmul.f32 %v942_v23, %v930_v19 }
  0x13   :  { %753 = vmatprep.mubr.msk.bf16.mxu0 %vm206_vm0, %v150_v28  ;;  %v166_v40 = vpack.c.bf16 %v119_v30, %v118_v29  ;;  %v123_v41 = vmul.f32 %v942_v23, %v935_v20  ;;  %v92_v43 = vmul.f32 %v920_v16, %v961_v32  ;;  %v93_v44 = vmul.f32 %v920_v16, %v966_v33  ;;  %p840_p3 = por %p839_p2, %p838_p1 }
  0x14   :  { %754 = vmatmul.mubr.msk.bf16.vlgmr.msra.gmra.mrb[0].mxu0 %vm206_vm0, %v151_v34  ;;  %v167_v42 = vpack.c.bf16 %v121_v35, %v120_v31  ;;  %v94_v46 = vmul.f32 %v920_v16, %v975_v38  ;;  %v95_v47 = vmul.f32 %v920_v16, %v980_v39  ;;  %v124_v48 = vmul.f32 %v942_v23, %v961_v32 }
  0x15   :  { %785 = vmatprep.mubr.msk.bf16.mxu1 %vm206_vm0, %v166_v40  ;;  %757 = vmatprep.mubr.msk.bf16.mxu0 %vm206_vm0, %v152_v36  ;;  %v168_v45 = vpack.c.bf16 %v123_v41, %v122_v37  ;;  %v125_v49 = vmul.f32 %v942_v23, %v966_v33  ;;  %v126_v51 = vmul.f32 %v942_v23, %v975_v38  ;;  %p841_p4 = pnand %p840_p3, %p834_p0 }
  0x16   :  { %786 = vmatmul.mubr.msk.bf16.vlgmr.msra.gmra.mrb[0].mxu1 %vm206_vm0, %v167_v42  ;;  %v127_v52 = vmul.f32 %v942_v23, %v980_v39  ;;  %v153_v53 = vpack.c.bf16 %v93_v44, %v92_v43  ;;  %v154_v54 = vpack.c.bf16 %v95_v47, %v94_v46  ;;  %v96_v62 = vmul.f32 %v920_v16, %v1011_v55 }
  0x17   :  { %789 = vmatprep.mubr.msk.bf16.mxu1 %vm206_vm0, %v168_v45  ;;  %v169_v57 = vpack.c.bf16 %v125_v49, %v124_v48  ;;  %v97_v63 = vmul.f32 %v920_v16, %v1016_v56  ;;  %v98_v0 = vmul.f32 %v920_v16, %v1021_v58  ;;  %v99_v1 = vmul.f32 %v920_v16, %v1026_v59 }
  0x18   :  { %v170_v61 = vpack.c.bf16 %v127_v52, %v126_v51  ;;  %v128_v2 = vmul.f32 %v942_v23, %v1011_v55  ;;  %v129_v3 = vmul.f32 %v942_v23, %v1016_v56  ;;  %v130_v4 = vmul.f32 %v942_v23, %v1021_v58 }
  0x19   :  { %v131_v5 = vmul.f32 %v942_v23, %v1026_v59  ;;  %v155_v7 = vpack.c.bf16 %v97_v63, %v96_v62  ;;  %v156_v8 = vpack.c.bf16 %v99_v1, %v98_v0  ;;  %v1063_v22 = vrot.slane %v65_v6, %v900_v11 }
  0x1a   :  { %v171_v17 = vpack.c.bf16 %v129_v3, %v128_v2  ;;  %v100_v24 = vmul.f32 %v920_v16, %v1052_v9  ;;  %v101_v25 = vmul.f32 %v920_v16, %v1057_v10  ;;  %v102_v26 = vmul.f32 %v1060_v12, %v907_v13 }
  0x1b   :  { %v172_v21 = vpack.c.bf16 %v131_v5, %v130_v4  ;;  %v103_v27 = vmul.f32 %v1060_v12, %v912_v14  ;;  %v132_v11 = vmul.f32 %v942_v23, %v1052_v9  ;;  %v133_v28 = vmul.f32 %v942_v23, %v1057_v10 }
  0x1c   :  { %758 = vmatmul.mubr.msk.bf16.gmra.mrb[4].mxu0 %vm206_vm0, %v153_v53  ;;  %v134_v16 = vmul.f32 %v1063_v22, %v907_v13  ;;  %v135_v29 = vmul.f32 %v1063_v22, %v912_v14  ;;  %v157_v30 = vpack.c.bf16 %v101_v25, %v100_v24  ;;  %v104_v36 = vmul.f32 %v1060_v12, %v917_v15 }
  0x1d   :  { %761 = vmatprep.mubr.msk.bf16.mxu0 %vm206_vm0, %v154_v54  ;;  %v158_v31 = vpack.c.bf16 %v103_v27, %v102_v26  ;;  %v173_v34 = vpack.c.bf16 %v133_v28, %v132_v11  ;;  %v105_v23 = vmul.f32 %v1060_v12, %v925_v18  ;;  %v106_v13 = vmul.f32 %v1060_v12, %v930_v19 }
  0x1e   :  { %790 = vmatmul.mubr.msk.bf16.gmra.mrb[4].mxu1 %vm206_vm0, %v169_v57  ;;  %v174_v35 = vpack.c.bf16 %v135_v29, %v134_v16  ;;  %v107_v14 = vmul.f32 %v1060_v12, %v935_v20  ;;  %v136_v37 = vmul.f32 %v1063_v22, %v917_v15  ;;  %v137_v40 = vmul.f32 %v1063_v22, %v925_v18 }
  0x1f   :  { %793 = vmatprep.mubr.msk.bf16.mxu1 %vm206_vm0, %v170_v61  ;;  %v138_v41 = vmul.f32 %v1063_v22, %v930_v19  ;;  %v139_v42 = vmul.f32 %v1063_v22, %v935_v20  ;;  %v159_v43 = vpack.c.bf16 %v105_v23, %v104_v36  ;;  %v108_v15 = vmul.f32 %v1060_v12, %v961_v32 }
  0x20   :  { %v160_v44 = vpack.c.bf16 %v107_v14, %v106_v13  ;;  %v175_v45 = vpack.c.bf16 %v137_v40, %v136_v37  ;;  %v109_v18 = vmul.f32 %v1060_v12, %v966_v33  ;;  %v110_v19 = vmul.f32 %v1060_v12, %v975_v38 }
  0x21   :  { %v176_v46 = vpack.c.bf16 %v139_v42, %v138_v41  ;;  %v111_v20 = vmul.f32 %v1060_v12, %v980_v39  ;;  %v140_v47 = vmul.f32 %v1063_v22, %v961_v32  ;;  %v141_v48 = vmul.f32 %v1063_v22, %v966_v33 }
  0x22   :  { %v142_v49 = vmul.f32 %v1063_v22, %v975_v38  ;;  %v143_v50 = vmul.f32 %v1063_v22, %v980_v39  ;;  %v161_v51 = vpack.c.bf16 %v109_v18, %v108_v15  ;;  %v112_v32 = vmul.f32 %v1060_v12, %v1011_v55 }
  0x23   :  { %v162_v52 = vpack.c.bf16 %v111_v20, %v110_v19  ;;  %v177_v53 = vpack.c.bf16 %v141_v48, %v140_v47  ;;  %v113_v33 = vmul.f32 %v1060_v12, %v1016_v56  ;;  %v114_v38 = vmul.f32 %v1060_v12, %v1021_v58 }
  0x24   :  { %762 = vmatmul.mubr.msk.bf16.gmra.mrb[8].mxu0 %vm206_vm0, %v155_v7  ;;  %v178_v54 = vpack.c.bf16 %v143_v50, %v142_v49  ;;  %v115_v39 = vmul.f32 %v1060_v12, %v1026_v59  ;;  %v144_v57 = vmul.f32 %v1063_v22, %v1011_v55  ;;  %v145_v60 = vmul.f32 %v1063_v22, %v1016_v56 }
  0x25   :  { %765 = vmatprep.mubr.msk.bf16.mxu0 %vm206_vm0, %v156_v8  ;;  %v146_v61 = vmul.f32 %v1063_v22, %v1021_v58  ;;  %v147_v62 = vmul.f32 %v1063_v22, %v1026_v59  ;;  %v163_v63 = vpack.c.bf16 %v113_v33, %v112_v32  ;;  %v116_v55 = vmul.f32 %v1060_v12, %v1052_v9 }
  0x26   :  { %794 = vmatmul.mubr.msk.bf16.gmra.mrb[8].mxu1 %vm206_vm0, %v171_v17  ;;  %v164_v0 = vpack.c.bf16 %v115_v39, %v114_v38  ;;  %v179_v1 = vpack.c.bf16 %v145_v60, %v144_v57  ;;  %v117_v56 = vmul.f32 %v1060_v12, %v1057_v10  ;;  %v148_v58 = vmul.f32 %v1063_v22, %v1052_v9 }
  0x27   :  { %797 = vmatprep.mubr.msk.bf16.mxu1 %vm206_vm0, %v172_v21  ;;  %v180_v2 = vpack.c.bf16 %v147_v62, %v146_v61  ;;  %v149_v59 = vmul.f32 %v1063_v22, %v1057_v10 }
  0x28   :  { %v165_v3 = vpack.c.bf16 %v117_v56, %v116_v55 }
  0x29   :  { %v181_v4 = vpack.c.bf16 %v149_v59, %v148_v58 }
  0x2c   :  { %766 = vmatmul.mubr.msk.bf16.gmra.mrb[12].mxu0 %vm206_vm0, %v157_v30 }
  0x2d   :  { %769 = vmatprep.mubr.msk.bf16.mxu0 %vm206_vm0, %v158_v31 }
  0x2e   :  { %798 = vmatmul.mubr.msk.bf16.gmra.mrb[12].mxu1 %vm206_vm0, %v173_v34 }
  0x2f   :  { %801 = vmatprep.mubr.msk.bf16.mxu1 %vm206_vm0, %v174_v35 }
  0x34   :  { %770 = vmatmul.mubr.msk.bf16.gmra.mrb[16].mxu0 %vm206_vm0, %v159_v43 }
  0x35   :  { %773 = vmatprep.mubr.msk.bf16.mxu0 %vm206_vm0, %v160_v44 }
  0x36   :  { %802 = vmatmul.mubr.msk.bf16.gmra.mrb[16].mxu1 %vm206_vm0, %v175_v45 }
  0x37   :  { %805 = vmatprep.mubr.msk.bf16.mxu1 %vm206_vm0, %v176_v46 }
  0x3c   :  { %774 = vmatmul.mubr.msk.bf16.gmra.mrb[20].mxu0 %vm206_vm0, %v161_v51 }
  0x3d   :  { %777 = vmatprep.mubr.msk.bf16.mxu0 %vm206_vm0, %v162_v52 }
  0x3e   :  { %806 = vmatmul.mubr.msk.bf16.gmra.mrb[20].mxu1 %vm206_vm0, %v177_v53 }
  0x3f   :  { %809 = vmatprep.mubr.msk.bf16.mxu1 %vm206_vm0, %v178_v54 }
  0x44   :  { %778 = vmatmul.mubr.msk.bf16.gmra.mrb[24].mxu0 %vm206_vm0, %v163_v63 }
  0x45   :  { %781 = vmatprep.mubr.msk.bf16.mxu0 %vm206_vm0, %v164_v0 }
  0x46   :  { %810 = vmatmul.mubr.msk.bf16.gmra.mrb[24].mxu1 %vm206_vm0, %v179_v1 }
  0x47   :  { %813 = vmatprep.mubr.msk.bf16.mxu1 %vm206_vm0, %v180_v2 }
  0x4c   :  { %782 = vmatmul.mubr.msk.bf16.gmra.mrb[28].mxu0 %vm206_vm0, %v165_v3 }
  0x4e   :  { %814 = vmatmul.mubr.msk.bf16.gmra.mrb[28].mxu1 %vm206_vm0, %v181_v4 }
  0xe7   :  { %v755_v5 = vpop.f32.mrb[0].mxu0 }
  0xe8   :  { %594 = vst [vmem:[#allocation2 + $0x10] sm:$0xff] %v755_v5  ;;  %v337_v6 = vpop.f32.mrb[1].mxu0 }
  0xe9   :  { %v787_v7 = vpop.f32.mrb[0].mxu1  ;;  %592 = vst [vmem:[#allocation2] sm:$0xff] %v337_v6  ;;  %v756_v8 = vpop.f32.mrb[2].mxu0 }
  0xea   :  { %626 = vst [vmem:[#allocation2 + $0x110] sm:$0xff] %v787_v7  ;;  %v465_v12 = vpop.f32.mrb[1].mxu1  ;;  %595 = vst [vmem:[#allocation2 + $0x18] sm:$0xff] %v756_v8  ;;  %v340_v9 = vpop.f32.mrb[3].mxu0 }
  0xeb   :  { %624 = vst [vmem:[#allocation2 + $0x100] sm:$0xff] %v465_v12  ;;  %v788_v10 = vpop.f32.mrb[2].mxu1  ;;  %593 = vst [vmem:[#allocation2 + $0x8] sm:$0xff] %v340_v9 }
  0xec   :  { %627 = vst [vmem:[#allocation2 + $0x118] sm:$0xff] %v788_v10  ;;  %v468_v17 = vpop.f32.mrb[3].mxu1 }
  0xed   :  { %625 = vst [vmem:[#allocation2 + $0x108] sm:$0xff] %v468_v17 }
  0xef   :  { %v759_v21 = vpop.f32.mrb[4].mxu0 }
  0xf0   :  { %598 = vst [vmem:[#allocation2 + $0x30] sm:$0xff] %v759_v21  ;;  %v353_v22 = vpop.f32.mrb[5].mxu0 }
  0xf1   :  { %v791_v24 = vpop.f32.mrb[4].mxu1  ;;  %596 = vst [vmem:[#allocation2 + $0x20] sm:$0xff] %v353_v22  ;;  %v760_v25 = vpop.f32.mrb[6].mxu0 }
  0xf2   :  { %630 = vst [vmem:[#allocation2 + $0x130] sm:$0xff] %v791_v24  ;;  %v481_v26 = vpop.f32.mrb[5].mxu1  ;;  %599 = vst [vmem:[#allocation2 + $0x38] sm:$0xff] %v760_v25  ;;  %v356_v27 = vpop.f32.mrb[7].mxu0 }
  0xf3   :  { %628 = vst [vmem:[#allocation2 + $0x120] sm:$0xff] %v481_v26  ;;  %v792_v11 = vpop.f32.mrb[6].mxu1  ;;  %597 = vst [vmem:[#allocation2 + $0x28] sm:$0xff] %v356_v27 }
  0xf4   :  { %631 = vst [vmem:[#allocation2 + $0x138] sm:$0xff] %v792_v11  ;;  %v484_v28 = vpop.f32.mrb[7].mxu1 }
  0xf5   :  { %629 = vst [vmem:[#allocation2 + $0x128] sm:$0xff] %v484_v28 }
  0xf7   :  { %v763_v16 = vpop.f32.mrb[8].mxu0 }
  0xf8   :  { %602 = vst [vmem:[#allocation2 + $0x50] sm:$0xff] %v763_v16  ;;  %v369_v29 = vpop.f32.mrb[9].mxu0 }
  0xf9   :  { %v795_v30 = vpop.f32.mrb[8].mxu1  ;;  %600 = vst [vmem:[#allocation2 + $0x40] sm:$0xff] %v369_v29  ;;  %v764_v31 = vpop.f32.mrb[10].mxu0 }
  0xfa   :  { %634 = vst [vmem:[#allocation2 + $0x150] sm:$0xff] %v795_v30  ;;  %v497_v34 = vpop.f32.mrb[9].mxu1  ;;  %603 = vst [vmem:[#allocation2 + $0x58] sm:$0xff] %v764_v31  ;;  %v372_v35 = vpop.f32.mrb[11].mxu0 }
  0xfb   :  { %632 = vst [vmem:[#allocation2 + $0x140] sm:$0xff] %v497_v34  ;;  %v796_v36 = vpop.f32.mrb[10].mxu1  ;;  %601 = vst [vmem:[#allocation2 + $0x48] sm:$0xff] %v372_v35 }
  0xfc   :  { %635 = vst [vmem:[#allocation2 + $0x158] sm:$0xff] %v796_v36  ;;  %v500_v23 = vpop.f32.mrb[11].mxu1 }
  0xfd   :  { %633 = vst [vmem:[#allocation2 + $0x148] sm:$0xff] %v500_v23 }
  0xff   :  { %v767_v13 = vpop.f32.mrb[12].mxu0 }
 0x100   :  { %606 = vst [vmem:[#allocation2 + $0x70] sm:$0xff] %v767_v13  ;;  %v385_v14 = vpop.f32.mrb[13].mxu0 }
 0x101   :  { %v799_v37 = vpop.f32.mrb[12].mxu1  ;;  %604 = vst [vmem:[#allocation2 + $0x60] sm:$0xff] %v385_v14  ;;  %v768_v40 = vpop.f32.mrb[14].mxu0 }
 0x102   :  { %638 = vst [vmem:[#allocation2 + $0x170] sm:$0xff] %v799_v37  ;;  %v513_v41 = vpop.f32.mrb[13].mxu1  ;;  %607 = vst [vmem:[#allocation2 + $0x78] sm:$0xff] %v768_v40  ;;  %v388_v42 = vpop.f32.mrb[15].mxu0 }
 0x103   :  { %636 = vst [vmem:[#allocation2 + $0x160] sm:$0xff] %v513_v41  ;;  %v800_v43 = vpop.f32.mrb[14].mxu1  ;;  %605 = vst [vmem:[#allocation2 + $0x68] sm:$0xff] %v388_v42 }
 0x104   :  { %639 = vst [vmem:[#allocation2 + $0x178] sm:$0xff] %v800_v43  ;;  %v516_v44 = vpop.f32.mrb[15].mxu1 }
 0x105   :  { %637 = vst [vmem:[#allocation2 + $0x168] sm:$0xff] %v516_v44 }
 0x107   :  { %v771_v45 = vpop.f32.mrb[16].mxu0 }
 0x108   :  { %610 = vst [vmem:[#allocation2 + $0x90] sm:$0xff] %v771_v45  ;;  %v401_v46 = vpop.f32.mrb[17].mxu0 }
 0x109   :  { %v803_v15 = vpop.f32.mrb[16].mxu1  ;;  %608 = vst [vmem:[#allocation2 + $0x80] sm:$0xff] %v401_v46  ;;  %v772_v18 = vpop.f32.mrb[18].mxu0 }
 0x10a   :  { %642 = vst [vmem:[#allocation2 + $0x190] sm:$0xff] %v803_v15  ;;  %v529_v19 = vpop.f32.mrb[17].mxu1  ;;  %611 = vst [vmem:[#allocation2 + $0x98] sm:$0xff] %v772_v18  ;;  %v404_v20 = vpop.f32.mrb[19].mxu0 }
 0x10b   :  { %640 = vst [vmem:[#allocation2 + $0x180] sm:$0xff] %v529_v19  ;;  %v804_v47 = vpop.f32.mrb[18].mxu1  ;;  %609 = vst [vmem:[#allocation2 + $0x88] sm:$0xff] %v404_v20 }
 0x10c   :  { %643 = vst [vmem:[#allocation2 + $0x198] sm:$0xff] %v804_v47  ;;  %v532_v48 = vpop.f32.mrb[19].mxu1 }
 0x10d   :  { %641 = vst [vmem:[#allocation2 + $0x188] sm:$0xff] %v532_v48 }
 0x10f   :  { %v775_v49 = vpop.f32.mrb[20].mxu0 }
 0x110   :  { %614 = vst [vmem:[#allocation2 + $0xb0] sm:$0xff] %v775_v49  ;;  %v417_v50 = vpop.f32.mrb[21].mxu0 }
 0x111   :  { %v807_v51 = vpop.f32.mrb[20].mxu1  ;;  %612 = vst [vmem:[#allocation2 + $0xa0] sm:$0xff] %v417_v50  ;;  %v776_v52 = vpop.f32.mrb[22].mxu0 }
 0x112   :  { %646 = vst [vmem:[#allocation2 + $0x1b0] sm:$0xff] %v807_v51  ;;  %v545_v53 = vpop.f32.mrb[21].mxu1  ;;  %615 = vst [vmem:[#allocation2 + $0xb8] sm:$0xff] %v776_v52  ;;  %v420_v54 = vpop.f32.mrb[23].mxu0 }
 0x113   :  { %644 = vst [vmem:[#allocation2 + $0x1a0] sm:$0xff] %v545_v53  ;;  %v808_v32 = vpop.f32.mrb[22].mxu1  ;;  %613 = vst [vmem:[#allocation2 + $0xa8] sm:$0xff] %v420_v54 }
 0x114   :  { %647 = vst [vmem:[#allocation2 + $0x1b8] sm:$0xff] %v808_v32  ;;  %v548_v33 = vpop.f32.mrb[23].mxu1 }
 0x115   :  { %645 = vst [vmem:[#allocation2 + $0x1a8] sm:$0xff] %v548_v33 }
 0x117   :  { %v779_v38 = vpop.f32.mrb[24].mxu0 }
 0x118   :  { %618 = vst [vmem:[#allocation2 + $0xd0] sm:$0xff] %v779_v38  ;;  %v433_v39 = vpop.f32.mrb[25].mxu0 }
 0x119   :  { %v811_v57 = vpop.f32.mrb[24].mxu1  ;;  %616 = vst [vmem:[#allocation2 + $0xc0] sm:$0xff] %v433_v39  ;;  %v780_v60 = vpop.f32.mrb[26].mxu0 }
 0x11a   :  { %650 = vst [vmem:[#allocation2 + $0x1d0] sm:$0xff] %v811_v57  ;;  %v561_v61 = vpop.f32.mrb[25].mxu1  ;;  %619 = vst [vmem:[#allocation2 + $0xd8] sm:$0xff] %v780_v60  ;;  %v436_v62 = vpop.f32.mrb[27].mxu0 }
 0x11b   :  { %648 = vst [vmem:[#allocation2 + $0x1c0] sm:$0xff] %v561_v61  ;;  %v812_v63 = vpop.f32.mrb[26].mxu1  ;;  %617 = vst [vmem:[#allocation2 + $0xc8] sm:$0xff] %v436_v62 }
 0x11c   :  { %651 = vst [vmem:[#allocation2 + $0x1d8] sm:$0xff] %v812_v63  ;;  %v564_v0 = vpop.f32.mrb[27].mxu1 }
 0x11d   :  { %649 = vst [vmem:[#allocation2 + $0x1c8] sm:$0xff] %v564_v0 }
 0x11f   :  { %v783_v1 = vpop.f32.mrb[28].mxu0 }
 0x120   :  { %622 = vst [vmem:[#allocation2 + $0xf0] sm:$0xff] %v783_v1  ;;  %v449_v2 = vpop.f32.mrb[29].mxu0 }
 0x121   :  { %v815_v55 = vpop.f32.mrb[28].mxu1  ;;  %620 = vst [vmem:[#allocation2 + $0xe0] sm:$0xff] %v449_v2  ;;  %v784_v56 = vpop.f32.mrb[30].mxu0 }
 0x122   :  { %654 = vst [vmem:[#allocation2 + $0x1f0] sm:$0xff] %v815_v55  ;;  %v577_v58 = vpop.f32.mrb[29].mxu1  ;;  %623 = vst [vmem:[#allocation2 + $0xf8] sm:$0xff] %v784_v56  ;;  %v452_v59 = vpop.f32.mrb[31].mxu0 }
 0x123   :  { %652 = vst [vmem:[#allocation2 + $0x1e0] sm:$0xff] %v577_v58  ;;  %v816_v3 = vpop.f32.mrb[30].mxu1  ;;  %621 = vst [vmem:[#allocation2 + $0xe8] sm:$0xff] %v452_v59 }
 0x124   :  { %655 = vst [vmem:[#allocation2 + $0x1f8] sm:$0xff] %v816_v3  ;;  %v580_v4 = vpop.f32.mrb[31].mxu1 }
 0x125   :  { %653 = vst [vmem:[#allocation2 + $0x1e8] sm:$0xff] %v580_v4 }
 0x126   :  { %844 = shalt.err (!%p841_p4)
}
 0x127   :  { %s845_s27 = scalar_lea.hbm %s1174_s3, 8192 }
 0x128   :  { %p846_p5 = scmp.ne.s32.totalorder %s1174_s3, %s845_s27  ;;  %p849_p6 = scmp.lt.u32.totalorder %s845_s27, %s1174_s3 }
 0x12a   :  { %p851_p7 = pnand %p849_p6, %p846_p5 }
 0x12c   :  { %854 = shalt.err (!%p851_p7)
}
 0x12d   :  { %s859_s5 = smov 128   ;;  %s860_s6 = smov 8  }
 0x12e   :  { %667 = dma.vmem_to_hbm [thread:$0]  %s662_s1, 8192, %s1174_s3, [#allocation3], %s859_s5, %s859_s5, %s860_s6  }
 0x12f   :  { %855 = dma.done.wait [#allocation3], 8192  }
 0x130   :  { %856 = vsyncadd [#allocation3], 4294959104 }
 0x131   :  { %671 = vsyncpa [#allocation3], 1 }

// kernel: tpu_custom_call.1
= control target key start
LH: loop header
LB: loop body
LE: loop exit
PB: predicated region body
PF: predicated region fallthrough
CT: control target
= control target key end

     0   :  { %v53_v2 = vlaneseq  ;;  %v857_v4 = vmov 1966171168   ;;  %s1171_s0 = inlined_call_operand.vmem [shape: f32[128,64], index: 0, kind: input, shape index: {}]   ;;  %s1172_s1 = inlined_call_operand.vmem [shape: f32[4,64], index: 1, kind: input, shape index: {}]   ;;  %s1173_s2 = inlined_call_operand.vmem [shape: bf16[64,128], index: 2, kind: input, shape index: {}]   ;;  %s1174_s3 = inlined_call_operand.hbm [shape: f32[4,128,128], index: 3, kind: output, shape index: {}]  }
   0x1   :  { %v829_v0 = vld [vmem:[%s1173_s2] sm:$0xff]   ;;  %v830_v1 = vld [vmem:[%s1173_s2 + $0x8] sm:$0xff]   ;;  %v831_v3 = vld [vmem:[%s1173_s2 + $0x10] sm:$0xff]   ;;  %v51_v5 = vunpack.c.l.s4 %v857_v4 }
   0x2   :  { %745 = vmatprep.subr.bf16.mxu0 %v829_v0  ;;  %817 = vmatprep.subr.bf16.mxu1 %v829_v0  ;;  %v54_v6 = vshrl.u32 %v53_v2, 7  ;;  %v832_v7 = vld [vmem:[%s1173_s2 + $0x18] sm:$0xff]   ;;  %v896_v9 = vld.sshfl [vmem:[%s1172_s1] sm:$0x33 pattern:$0x75316420] }
   0x3   :  { %746 = vmatpush3.bf16.msra.mxu0 %v829_v0  ;;  %821 = vmatpush3.bf16.msra.mxu1 %v829_v0  ;;  %v52_v8 = vunpack.c.0.s8 %v51_v5 }
   0x4   :  { %747 = vmatprep.subr.bf16.mxu0 %v830_v1  ;;  %818 = vmatprep.subr.bf16.mxu1 %v830_v1 }
   0x7   :  { %748 = vmatpush3.bf16.msra.mxu0 %v830_v1  ;;  %822 = vmatpush3.bf16.msra.mxu1 %v830_v1 }
   0x8   :  { %749 = vmatprep.subr.bf16.mxu0 %v831_v3  ;;  %819 = vmatprep.subr.bf16.mxu1 %v831_v3 }
   0x9   :  { %8 = vsyncpa [#allocation3], 0  ;;  %v898_v10 = vsub.s32 %v52_v8, %v54_v6  ;;  %v900_v11 = vsub.s32 0, %v54_v6  ;;  %v907_v13 = vld [vmem:[%s1171_s0] sm:$0xff]  ;;  %v912_v14 = vld [vmem:[%s1171_s0 + $0x8] sm:$0xff]  ;;  %vm206_vm0 = vcmask 523264   ;;  %v49_v50 = vcombine.high %v896_v9, %v896_v9 }
   0xa   :  { %v917_v15 = vld [vmem:[%s1171_s0 + $0x10] sm:$0xff]  ;;  %v925_v18 = vld [vmem:[%s1171_s0 + $0x18] sm:$0xff]  ;;  %v930_v19 = vld [vmem:[%s1171_s0 + $0x20] sm:$0xff] }
   0xb   :  { %750 = vmatpush3.bf16.msra.mxu0 %v831_v3  ;;  %823 = vmatpush3.bf16.msra.mxu1 %v831_v3  ;;  %v56_v12 = vrot.slane %v896_v9, %v898_v10  ;;  %v935_v20 = vld [vmem:[%s1171_s0 + $0x28] sm:$0xff]  ;;  %v961_v32 = vld [vmem:[%s1171_s0 + $0x30] sm:$0xff]  ;;  %v966_v33 = vld [vmem:[%s1171_s0 + $0x38] sm:$0xff]  ;;  %v63_v60 = vrot.slane %v49_v50, %v898_v10 }
   0xc   :  { %751 = vmatprep.subr.bf16.mxu0 %v832_v7  ;;  %820 = vmatprep.subr.bf16.mxu1 %v832_v7  ;;  %v975_v38 = vld [vmem:[%s1171_s0 + $0x40] sm:$0xff]  ;;  %v980_v39 = vld [vmem:[%s1171_s0 + $0x48] sm:$0xff]  ;;  %v1011_v55 = vld [vmem:[%s1171_s0 + $0x50] sm:$0xff] }
   0xd   :  { %v920_v16 = vrot.slane %v56_v12, %v900_v11  ;;  %v64_v17 = vcombine.high %v56_v12, %v56_v12  ;;  %v1016_v56 = vld [vmem:[%s1171_s0 + $0x58] sm:$0xff]  ;;  %v1021_v58 = vld [vmem:[%s1171_s0 + $0x60] sm:$0xff]  ;;  %v1026_v59 = vld [vmem:[%s1171_s0 + $0x68] sm:$0xff]  ;;  %v65_v6 = vcombine.high %v63_v60, %v63_v60  ;;  %v1060_v12 = vrot.slane %v63_v60, %v900_v11 }
   0xe   :  { %v1052_v9 = vld [vmem:[%s1171_s0 + $0x70] sm:$0xff]  ;;  %v1057_v10 = vld [vmem:[%s1171_s0 + $0x78] sm:$0xff]  ;;  %s858_s0 = smov [#allocation2]  }
   0xf   :  { %752 = vmatpush3.bf16.msra.mxu0 %v832_v7  ;;  %824 = vmatpush3.bf16.msra.mxu1 %v832_v7  ;;  %v86_v21 = vmul.f32 %v920_v16, %v907_v13  ;;  %v87_v22 = vmul.f32 %v920_v16, %v912_v14  ;;  %v942_v23 = vrot.slane %v64_v17, %v900_v11  ;;  %s661_s1 = sshll.u32 %s858_s0, 4  ;;  %s662_s1 = int_to_ptr.vmem [resolvable:$true] %s661_s1 }
  0x10   :  { %v88_v24 = vmul.f32 %v920_v16, %v917_v15  ;;  %v89_v25 = vmul.f32 %v920_v16, %v925_v18  ;;  %v90_v26 = vmul.f32 %v920_v16, %v930_v19  ;;  %v91_v27 = vmul.f32 %v920_v16, %v935_v20  ;;  %s833_s24 = scalar_lea.vmem %s662_s1, 8192  ;;  %p838_p1 = scmp.lt.s32.totalorder %s662_s1, %s662_s1 }
  0x11   :  { %v150_v28 = vpack.c.bf16 %v87_v22, %v86_v21  ;;  %v118_v29 = vmul.f32 %v942_v23, %v907_v13  ;;  %v119_v30 = vmul.f32 %v942_v23, %v912_v14  ;;  %v120_v31 = vmul.f32 %v942_v23, %v917_v15  ;;  %p834_p0 = scmp.ne.s32.totalorder %s662_s1, %s833_s24  ;;  %p839_p2 = scmp.lt.s32.totalorder %s833_s24, %s833_s24 }
  0x12   :  { %v151_v34 = vpack.c.bf16 %v89_v25, %v88_v24  ;;  %v121_v35 = vmul.f32 %v942_v23, %v925_v18  ;;  %v152_v36 = vpack.c.bf16 %v91_v27, %v90_v26  ;;  %v122_v37 = vmul.f32 %v942_v23, %v930_v19 }
  0x13   :  { %753 = vmatprep.mubr.msk.bf16.mxu0 %vm206_vm0, %v150_v28  ;;  %v166_v40 = vpack.c.bf16 %v119_v30, %v118_v29  ;;  %v123_v41 = vmul.f32 %v942_v23, %v935_v20  ;;  %v92_v43 = vmul.f32 %v920_v16, %v961_v32  ;;  %v93_v44 = vmul.f32 %v920_v16, %v966_v33  ;;  %p840_p3 = por %p839_p2, %p838_p1 }
  0x14   :  { %754 = vmatmul.mubr.msk.bf16.vlgmr.msra.gmra.mrb[0].mxu0 %vm206_vm0, %v151_v34  ;;  %v167_v42 = vpack.c.bf16 %v121_v35, %v120_v31  ;;  %v94_v46 = vmul.f32 %v920_v16, %v975_v38  ;;  %v95_v47 = vmul.f32 %v920_v16, %v980_v39  ;;  %v124_v48 = vmul.f32 %v942_v23, %v961_v32 }
  0x15   :  { %785 = vmatprep.mubr.msk.bf16.mxu1 %vm206_vm0, %v166_v40  ;;  %757 = vmatprep.mubr.msk.bf16.mxu0 %vm206_vm0, %v152_v36  ;;  %v168_v45 = vpack.c.bf16 %v123_v41, %v122_v37  ;;  %v125_v49 = vmul.f32 %v942_v23, %v966_v33  ;;  %v126_v51 = vmul.f32 %v942_v23, %v975_v38  ;;  %p841_p4 = pnand %p840_p3, %p834_p0 }
  0x16   :  { %786 = vmatmul.mubr.msk.bf16.vlgmr.msra.gmra.mrb[0].mxu1 %vm206_vm0, %v167_v42  ;;  %v127_v52 = vmul.f32 %v942_v23, %v980_v39  ;;  %v153_v53 = vpack.c.bf16 %v93_v44, %v92_v43  ;;  %v154_v54 = vpack.c.bf16 %v95_v47, %v94_v46  ;;  %v96_v62 = vmul.f32 %v920_v16, %v1011_v55 }
  0x17   :  { %789 = vmatprep.mubr.msk.bf16.mxu1 %vm206_vm0, %v168_v45  ;;  %v169_v57 = vpack.c.bf16 %v125_v49, %v124_v48  ;;  %v97_v63 = vmul.f32 %v920_v16, %v1016_v56  ;;  %v98_v0 = vmul.f32 %v920_v16, %v1021_v58  ;;  %v99_v1 = vmul.f32 %v920_v16, %v1026_v59 }
  0x18   :  { %v170_v61 = vpack.c.bf16 %v127_v52, %v126_v51  ;;  %v128_v2 = vmul.f32 %v942_v23, %v1011_v55  ;;  %v129_v3 = vmul.f32 %v942_v23, %v1016_v56  ;;  %v130_v4 = vmul.f32 %v942_v23, %v1021_v58 }
  0x19   :  { %v131_v5 = vmul.f32 %v942_v23, %v1026_v59  ;;  %v155_v7 = vpack.c.bf16 %v97_v63, %v96_v62  ;;  %v156_v8 = vpack.c.bf16 %v99_v1, %v98_v0  ;;  %v1063_v22 = vrot.slane %v65_v6, %v900_v11 }
  0x1a   :  { %v171_v17 = vpack.c.bf16 %v129_v3, %v128_v2  ;;  %v100_v24 = vmul.f32 %v920_v16, %v1052_v9  ;;  %v101_v25 = vmul.f32 %v920_v16, %v1057_v10  ;;  %v102_v26 = vmul.f32 %v1060_v12, %v907_v13 }
  0x1b   :  { %v172_v21 = vpack.c.bf16 %v131_v5, %v130_v4  ;;  %v103_v27 = vmul.f32 %v1060_v12, %v912_v14  ;;  %v132_v11 = vmul.f32 %v942_v23, %v1052_v9  ;;  %v133_v28 = vmul.f32 %v942_v23, %v1057_v10 }
  0x1c   :  { %758 = vmatmul.mubr.msk.bf16.gmra.mrb[4].mxu0 %vm206_vm0, %v153_v53  ;;  %v134_v16 = vmul.f32 %v1063_v22, %v907_v13  ;;  %v135_v29 = vmul.f32 %v1063_v22, %v912_v14  ;;  %v157_v30 = vpack.c.bf16 %v101_v25, %v100_v24  ;;  %v104_v36 = vmul.f32 %v1060_v12, %v917_v15 }
  0x1d   :  { %761 = vmatprep.mubr.msk.bf16.mxu0 %vm206_vm0, %v154_v54  ;;  %v158_v31 = vpack.c.bf16 %v103_v27, %v102_v26  ;;  %v173_v34 = vpack.c.bf16 %v133_v28, %v132_v11  ;;  %v105_v23 = vmul.f32 %v1060_v12, %v925_v18  ;;  %v106_v13 = vmul.f32 %v1060_v12, %v930_v19 }
  0x1e   :  { %790 = vmatmul.mubr.msk.bf16.gmra.mrb[4].mxu1 %vm206_vm0, %v169_v57  ;;  %v174_v35 = vpack.c.bf16 %v135_v29, %v134_v16  ;;  %v107_v14 = vmul.f32 %v1060_v12, %v935_v20  ;;  %v136_v37 = vmul.f32 %v1063_v22, %v917_v15  ;;  %v137_v40 = vmul.f32 %v1063_v22, %v925_v18 }
  0x1f   :  { %793 = vmatprep.mubr.msk.bf16.mxu1 %vm206_vm0, %v170_v61  ;;  %v138_v41 = vmul.f32 %v1063_v22, %v930_v19  ;;  %v139_v42 = vmul.f32 %v1063_v22, %v935_v20  ;;  %v159_v43 = vpack.c.bf16 %v105_v23, %v104_v36  ;;  %v108_v15 = vmul.f32 %v1060_v12, %v961_v32 }
  0x20   :  { %v160_v44 = vpack.c.bf16 %v107_v14, %v106_v13  ;;  %v175_v45 = vpack.c.bf16 %v137_v40, %v136_v37  ;;  %v109_v18 = vmul.f32 %v1060_v12, %v966_v33  ;;  %v110_v19 = vmul.f32 %v1060_v12, %v975_v38 }
  0x21   :  { %v176_v46 = vpack.c.bf16 %v139_v42, %v138_v41  ;;  %v111_v20 = vmul.f32 %v1060_v12, %v980_v39  ;;  %v140_v47 = vmul.f32 %v1063_v22, %v961_v32  ;;  %v141_v48 = vmul.f32 %v1063_v22, %v966_v33 }
  0x22   :  { %v142_v49 = vmul.f32 %v1063_v22, %v975_v38  ;;  %v143_v50 = vmul.f32 %v1063_v22, %v980_v39  ;;  %v161_v51 = vpack.c.bf16 %v109_v18, %v108_v15  ;;  %v112_v32 = vmul.f32 %v1060_v12, %v1011_v55 }
  0x23   :  { %v162_v52 = vpack.c.bf16 %v111_v20, %v110_v19  ;;  %v177_v53 = vpack.c.bf16 %v141_v48, %v140_v47  ;;  %v113_v33 = vmul.f32 %v1060_v12, %v1016_v56  ;;  %v114_v38 = vmul.f32 %v1060_v12, %v1021_v58 }
  0x24   :  { %762 = vmatmul.mubr.msk.bf16.gmra.mrb[8].mxu0 %vm206_vm0, %v155_v7  ;;  %v178_v54 = vpack.c.bf16 %v143_v50, %v142_v49  ;;  %v115_v39 = vmul.f32 %v1060_v12, %v1026_v59  ;;  %v144_v57 = vmul.f32 %v1063_v22, %v1011_v55  ;;  %v145_v60 = vmul.f32 %v1063_v22, %v1016_v56 }
  0x25   :  { %765 = vmatprep.mubr.msk.bf16.mxu0 %vm206_vm0, %v156_v8  ;;  %v146_v61 = vmul.f32 %v1063_v22, %v1021_v58  ;;  %v147_v62 = vmul.f32 %v1063_v22, %v1026_v59  ;;  %v163_v63 = vpack.c.bf16 %v113_v33, %v112_v32  ;;  %v116_v55 = vmul.f32 %v1060_v12, %v1052_v9 }
  0x26   :  { %794 = vmatmul.mubr.msk.bf16.gmra.mrb[8].mxu1 %vm206_vm0, %v171_v17  ;;  %v164_v0 = vpack.c.bf16 %v115_v39, %v114_v38  ;;  %v179_v1 = vpack.c.bf16 %v145_v60, %v144_v57  ;;  %v117_v56 = vmul.f32 %v1060_v12, %v1057_v10  ;;  %v148_v58 = vmul.f32 %v1063_v22, %v1052_v9 }
  0x27   :  { %797 = vmatprep.mubr.msk.bf16.mxu1 %vm206_vm0, %v172_v21  ;;  %v180_v2 = vpack.c.bf16 %v147_v62, %v146_v61  ;;  %v149_v59 = vmul.f32 %v1063_v22, %v1057_v10 }
  0x28   :  { %v165_v3 = vpack.c.bf16 %v117_v56, %v116_v55 }
  0x29   :  { %v181_v4 = vpack.c.bf16 %v149_v59, %v148_v58 }
  0x2c   :  { %766 = vmatmul.mubr.msk.bf16.gmra.mrb[12].mxu0 %vm206_vm0, %v157_v30 }
  0x2d   :  { %769 = vmatprep.mubr.msk.bf16.mxu0 %vm206_vm0, %v158_v31 }
  0x2e   :  { %798 = vmatmul.mubr.msk.bf16.gmra.mrb[12].mxu1 %vm206_vm0, %v173_v34 }
  0x2f   :  { %801 = vmatprep.mubr.msk.bf16.mxu1 %vm206_vm0, %v174_v35 }
  0x34   :  { %770 = vmatmul.mubr.msk.bf16.gmra.mrb[16].mxu0 %vm206_vm0, %v159_v43 }
  0x35   :  { %773 = vmatprep.mubr.msk.bf16.mxu0 %vm206_vm0, %v160_v44 }
  0x36   :  { %802 = vmatmul.mubr.msk.bf16.gmra.mrb[16].mxu1 %vm206_vm0, %v175_v45 }
  0x37   :  { %805 = vmatprep.mubr.msk.bf16.mxu1 %vm206_vm0, %v176_v46 }
  0x3c   :  { %774 = vmatmul.mubr.msk.bf16.gmra.mrb[20].mxu0 %vm206_vm0, %v161_v51 }
  0x3d   :  { %777 = vmatprep.mubr.msk.bf16.mxu0 %vm206_vm0, %v162_v52 }
  0x3e   :  { %806 = vmatmul.mubr.msk.bf16.gmra.mrb[20].mxu1 %vm206_vm0, %v177_v53 }
  0x3f   :  { %809 = vmatprep.mubr.msk.bf16.mxu1 %vm206_vm0, %v178_v54 }
  0x44   :  { %778 = vmatmul.mubr.msk.bf16.gmra.mrb[24].mxu0 %vm206_vm0, %v163_v63 }
  0x45   :  { %781 = vmatprep.mubr.msk.bf16.mxu0 %vm206_vm0, %v164_v0 }
  0x46   :  { %810 = vmatmul.mubr.msk.bf16.gmra.mrb[24].mxu1 %vm206_vm0, %v179_v1 }
  0x47   :  { %813 = vmatprep.mubr.msk.bf16.mxu1 %vm206_vm0, %v180_v2 }
  0x4c   :  { %782 = vmatmul.mubr.msk.bf16.gmra.mrb[28].mxu0 %vm206_vm0, %v165_v3 }
  0x4e   :  { %814 = vmatmul.mubr.msk.bf16.gmra.mrb[28].mxu1 %vm206_vm0, %v181_v4 }
  0xe7   :  { %v755_v5 = vpop.f32.mrb[0].mxu0 }
  0xe8   :  { %594 = vst [vmem:[#allocation2 + $0x10] sm:$0xff] %v755_v5  ;;  %v337_v6 = vpop.f32.mrb[1].mxu0 }
  0xe9   :  { %v787_v7 = vpop.f32.mrb[0].mxu1  ;;  %592 = vst [vmem:[#allocation2] sm:$0xff] %v337_v6  ;;  %v756_v8 = vpop.f32.mrb[2].mxu0 }
  0xea   :  { %626 = vst [vmem:[#allocation2 + $0x110] sm:$0xff] %v787_v7  ;;  %v465_v12 = vpop.f32.mrb[1].mxu1  ;;  %595 = vst [vmem:[#allocation2 + $0x18] sm:$0xff] %v756_v8  ;;  %v340_v9 = vpop.f32.mrb[3].mxu0 }
  0xeb   :  { %624 = vst [vmem:[#allocation2 + $0x100] sm:$0xff] %v465_v12  ;;  %v788_v10 = vpop.f32.mrb[2].mxu1  ;;  %593 = vst [vmem:[#allocation2 + $0x8] sm:$0xff] %v340_v9 }
  0xec   :  { %627 = vst [vmem:[#allocation2 + $0x118] sm:$0xff] %v788_v10  ;;  %v468_v17 = vpop.f32.mrb[3].mxu1 }
  0xed   :  { %625 = vst [vmem:[#allocation2 + $0x108] sm:$0xff] %v468_v17 }
  0xef   :  { %v759_v21 = vpop.f32.mrb[4].mxu0 }
  0xf0   :  { %598 = vst [vmem:[#allocation2 + $0x30] sm:$0xff] %v759_v21  ;;  %v353_v22 = vpop.f32.mrb[5].mxu0 }
  0xf1   :  { %v791_v24 = vpop.f32.mrb[4].mxu1  ;;  %596 = vst [vmem:[#allocation2 + $0x20] sm:$0xff] %v353_v22  ;;  %v760_v25 = vpop.f32.mrb[6].mxu0 }
  0xf2   :  { %630 = vst [vmem:[#allocation2 + $0x130] sm:$0xff] %v791_v24  ;;  %v481_v26 = vpop.f32.mrb[5].mxu1  ;;  %599 = vst [vmem:[#allocation2 + $0x38] sm:$0xff] %v760_v25  ;;  %v356_v27 = vpop.f32.mrb[7].mxu0 }
  0xf3   :  { %628 = vst [vmem:[#allocation2 + $0x120] sm:$0xff] %v481_v26  ;;  %v792_v11 = vpop.f32.mrb[6].mxu1  ;;  %597 = vst [vmem:[#allocation2 + $0x28] sm:$0xff] %v356_v27 }
  0xf4   :  { %631 = vst [vmem:[#allocation2 + $0x138] sm:$0xff] %v792_v11  ;;  %v484_v28 = vpop.f32.mrb[7].mxu1 }
  0xf5   :  { %629 = vst [vmem:[#allocation2 + $0x128] sm:$0xff] %v484_v28 }
  0xf7   :  { %v763_v16 = vpop.f32.mrb[8].mxu0 }
  0xf8   :  { %602 = vst [vmem:[#allocation2 + $0x50] sm:$0xff] %v763_v16  ;;  %v369_v29 = vpop.f32.mrb[9].mxu0 }
  0xf9   :  { %v795_v30 = vpop.f32.mrb[8].mxu1  ;;  %600 = vst [vmem:[#allocation2 + $0x40] sm:$0xff] %v369_v29  ;;  %v764_v31 = vpop.f32.mrb[10].mxu0 }
  0xfa   :  { %634 = vst [vmem:[#allocation2 + $0x150] sm:$0xff] %v795_v30  ;;  %v497_v34 = vpop.f32.mrb[9].mxu1  ;;  %603 = vst [vmem:[#allocation2 + $0x58] sm:$0xff] %v764_v31  ;;  %v372_v35 = vpop.f32.mrb[11].mxu0 }
  0xfb   :  { %632 = vst [vmem:[#allocation2 + $0x140] sm:$0xff] %v497_v34  ;;  %v796_v36 = vpop.f32.mrb[10].mxu1  ;;  %601 = vst [vmem:[#allocation2 + $0x48] sm:$0xff] %v372_v35 }
  0xfc   :  { %635 = vst [vmem:[#allocation2 + $0x158] sm:$0xff] %v796_v36  ;;  %v500_v23 = vpop.f32.mrb[11].mxu1 }
  0xfd   :  { %633 = vst [vmem:[#allocation2 + $0x148] sm:$0xff] %v500_v23 }
  0xff   :  { %v767_v13 = vpop.f32.mrb[12].mxu0 }
 0x100   :  { %606 = vst [vmem:[#allocation2 + $0x70] sm:$0xff] %v767_v13  ;;  %v385_v14 = vpop.f32.mrb[13].mxu0 }
 0x101   :  { %v799_v37 = vpop.f32.mrb[12].mxu1  ;;  %604 = vst [vmem:[#allocation2 + $0x60] sm:$0xff] %v385_v14  ;;  %v768_v40 = vpop.f32.mrb[14].mxu0 }
 0x102   :  { %638 = vst [vmem:[#allocation2 + $0x170] sm:$0xff] %v799_v37  ;;  %v513_v41 = vpop.f32.mrb[13].mxu1  ;;  %607 = vst [vmem:[#allocation2 + $0x78] sm:$0xff] %v768_v40  ;;  %v388_v42 = vpop.f32.mrb[15].mxu0 }
 0x103   :  { %636 = vst [vmem:[#allocation2 + $0x160] sm:$0xff] %v513_v41  ;;  %v800_v43 = vpop.f32.mrb[14].mxu1  ;;  %605 = vst [vmem:[#allocation2 + $0x68] sm:$0xff] %v388_v42 }
 0x104   :  { %639 = vst [vmem:[#allocation2 + $0x178] sm:$0xff] %v800_v43  ;;  %v516_v44 = vpop.f32.mrb[15].mxu1 }
 0x105   :  { %637 = vst [vmem:[#allocation2 + $0x168] sm:$0xff] %v516_v44 }
 0x107   :  { %v771_v45 = vpop.f32.mrb[16].mxu0 }
 0x108   :  { %610 = vst [vmem:[#allocation2 + $0x90] sm:$0xff] %v771_v45  ;;  %v401_v46 = vpop.f32.mrb[17].mxu0 }
 0x109   :  { %v803_v15 = vpop.f32.mrb[16].mxu1  ;;  %608 = vst [vmem:[#allocation2 + $0x80] sm:$0xff] %v401_v46  ;;  %v772_v18 = vpop.f32.mrb[18].mxu0 }
 0x10a   :  { %642 = vst [vmem:[#allocation2 + $0x190] sm:$0xff] %v803_v15  ;;  %v529_v19 = vpop.f32.mrb[17].mxu1  ;;  %611 = vst [vmem:[#allocation2 + $0x98] sm:$0xff] %v772_v18  ;;  %v404_v20 = vpop.f32.mrb[19].mxu0 }
 0x10b   :  { %640 = vst [vmem:[#allocation2 + $0x180] sm:$0xff] %v529_v19  ;;  %v804_v47 = vpop.f32.mrb[18].mxu1  ;;  %609 = vst [vmem:[#allocation2 + $0x88] sm:$0xff] %v404_v20 }
 0x10c   :  { %643 = vst [vmem:[#allocation2 + $0x198] sm:$0xff] %v804_v47  ;;  %v532_v48 = vpop.f32.mrb[19].mxu1 }
 0x10d   :  { %641 = vst [vmem:[#allocation2 + $0x188] sm:$0xff] %v532_v48 }
 0x10f   :  { %v775_v49 = vpop.f32.mrb[20].mxu0 }
 0x110   :  { %614 = vst [vmem:[#allocation2 + $0xb0] sm:$0xff] %v775_v49  ;;  %v417_v50 = vpop.f32.mrb[21].mxu0 }
 0x111   :  { %v807_v51 = vpop.f32.mrb[20].mxu1  ;;  %612 = vst [vmem:[#allocation2 + $0xa0] sm:$0xff] %v417_v50  ;;  %v776_v52 = vpop.f32.mrb[22].mxu0 }
 0x112   :  { %646 = vst [vmem:[#allocation2 + $0x1b0] sm:$0xff] %v807_v51  ;;  %v545_v53 = vpop.f32.mrb[21].mxu1  ;;  %615 = vst [vmem:[#allocation2 + $0xb8] sm:$0xff] %v776_v52  ;;  %v420_v54 = vpop.f32.mrb[23].mxu0 }
 0x113   :  { %644 = vst [vmem:[#allocation2 + $0x1a0] sm:$0xff] %v545_v53  ;;  %v808_v32 = vpop.f32.mrb[22].mxu1  ;;  %613 = vst [vmem:[#allocation2 + $0xa8] sm:$0xff] %v420_v54 }
 0x114   :  { %647 = vst [vmem:[#allocation2 + $0x1b8] sm:$0xff] %v808_v32  ;;  %v548_v33 = vpop.f32.mrb[23].mxu1 }
 0x115   :  { %645 = vst [vmem:[#allocation2 + $0x1a8] sm:$0xff] %v548_v33 }
 0x117   :  { %v779_v38 = vpop.f32.mrb[24].mxu0 }
 0x118   :  { %618 = vst [vmem:[#allocation2 + $0xd0] sm:$0xff] %v779_v38  ;;  %v433_v39 = vpop.f32.mrb[25].mxu0 }
 0x119   :  { %v811_v57 = vpop.f32.mrb[24].mxu1  ;;  %616 = vst [vmem:[#allocation2 + $0xc0] sm:$0xff] %v433_v39  ;;  %v780_v60 = vpop.f32.mrb[26].mxu0 }
 0x11a   :  { %650 = vst [vmem:[#allocation2 + $0x1d0] sm:$0xff] %v811_v57  ;;  %v561_v61 = vpop.f32.mrb[25].mxu1  ;;  %619 = vst [vmem:[#allocation2 + $0xd8] sm:$0xff] %v780_v60  ;;  %v436_v62 = vpop.f32.mrb[27].mxu0 }
 0x11b   :  { %648 = vst [vmem:[#allocation2 + $0x1c0] sm:$0xff] %v561_v61  ;;  %v812_v63 = vpop.f32.mrb[26].mxu1  ;;  %617 = vst [vmem:[#allocation2 + $0xc8] sm:$0xff] %v436_v62 }
 0x11c   :  { %651 = vst [vmem:[#allocation2 + $0x1d8] sm:$0xff] %v812_v63  ;;  %v564_v0 = vpop.f32.mrb[27].mxu1 }
 0x11d   :  { %649 = vst [vmem:[#allocation2 + $0x1c8] sm:$0xff] %v564_v0 }
 0x11f   :  { %v783_v1 = vpop.f32.mrb[28].mxu0 }
 0x120   :  { %622 = vst [vmem:[#allocation2 + $0xf0] sm:$0xff] %v783_v1  ;;  %v449_v2 = vpop.f32.mrb[29].mxu0 }
 0x121   :  { %v815_v55 = vpop.f32.mrb[28].mxu1  ;;  %620 = vst [vmem:[#allocation2 + $0xe0] sm:$0xff] %v449_v2  ;;  %v784_v56 = vpop.f32.mrb[30].mxu0 }
 0x122   :  { %654 = vst [vmem:[#allocation2 + $0x1f0] sm:$0xff] %v815_v55  ;;  %v577_v58 = vpop.f32.mrb[29].mxu1  ;;  %623 = vst [vmem:[#allocation2 + $0xf8] sm:$0xff] %v784_v56  ;;  %v452_v59 = vpop.f32.mrb[31].mxu0 }
 0x123   :  { %652 = vst [vmem:[#allocation2 + $0x1e0] sm:$0xff] %v577_v58  ;;  %v816_v3 = vpop.f32.mrb[30].mxu1  ;;  %621 = vst [vmem:[#allocation2 + $0xe8] sm:$0xff] %v452_v59 }
 0x124   :  { %655 = vst [vmem:[#allocation2 + $0x1f8] sm:$0xff] %v816_v3  ;;  %v580_v4 = vpop.f32.mrb[31].mxu1 }
 0x125   :  { %653 = vst [vmem:[#allocation2 + $0x1e8] sm:$0xff] %v580_v4 }
 0x126   :  { %844 = shalt.err (!%p841_p4)
}
 0x127   :  { %s845_s27 = scalar_lea.hbm %s1174_s3, 8192 }
 0x128   :  { %p846_p5 = scmp.ne.s32.totalorder %s1174_s3, %s845_s27  ;;  %p849_p6 = scmp.lt.u32.totalorder %s845_s27, %s1174_s3 }
 0x12a   :  { %p851_p7 = pnand %p849_p6, %p846_p5 }
 0x12c   :  { %854 = shalt.err (!%p851_p7)
}
 0x12d   :  { %s859_s5 = smov 128   ;;  %s860_s6 = smov 8  }
 0x12e   :  { %667 = dma.vmem_to_hbm [thread:$0]  %s662_s1, 8192, %s1174_s3, [#allocation3], %s859_s5, %s859_s5, %s860_s6  }
 0x12f   :  { %855 = dma.done.wait [#allocation3], 8192  }
 0x130   :  { %856 = vsyncadd [#allocation3], 4294959104 }
 0x131   :  { %671 = vsyncpa [#allocation3], 1 }

</bundles_post_ra>
